<compile_context>
chip_gen: v6e
topology: v6e:2x2x1
jax: 0.10.0
libtpu: 0.0.40
codegen_flags: <defaults>
</compile_context>

<pallas_src>
import jax
import jax.numpy as jnp
from jax.experimental import pallas as pl
from jax.experimental.pallas import tpu as pltpu

INNER_SHAPE = (4, 4)   # Linear(4, 4): weight [4, 4], bias [4]
OUTER_SHAPE = (4, 5)   # Linear(4, 5): weight [5, 4], bias [5]

IN_F = 4               # fused contraction dim
OUT_F = 5              # true output width
OUT_PAD = 8            # packed-param lane width (sublane-friendly, >= OUT_F)
PARAM_ROWS = 8         # rows 0..3 = fused weight, row 4 = fused bias


def fused_model_kernel(x_ref, wb_ref, o_ref):
    """out = x @ W_fused + b_fused via 4 VPU broadcast-FMAs.

    x_ref  : [TM, 4]  batch tile (last block may be partial; pad rows compute
                      on padding and are masked on the output store)
    wb_ref : [8, 8]   rows 0..3 = fused weight (lane-padded to 8), row 4 = bias
    o_ref  : [TM, 5]  true-width output (narrow masked stores; DMA bytes, not
                      store slots, are the binding resource here)
    """
    x = x_ref[...]                                   # [TM, 4]
    acc = wb_ref[IN_F:IN_F + 1, :]                   # bias row [1, 8]
    # K=4, N=5 is far below an MXU tile -> accumulate on the VPU; every
    # operand stays <= 8 lanes wide, no [TM, 128] MXU result materialized.
    for k in range(IN_F):                            # unrolled at trace time
        acc = acc + x[:, k:k + 1] * wb_ref[k:k + 1, :]
    o_ref[...] = acc[:, :OUT_F]


def _round_up(a, m):
    return (a + m - 1) // m * m


def _fuse_params(wi, bi, wo, bo):
    wi = wi.astype(jnp.float32)
    bi = bi.astype(jnp.float32)
    wo = wo.astype(jnp.float32)
    bo = bo.astype(jnp.float32)
    w_fused = 2.0 * (wi.T @ wo.T)          # [4, 5]
    b_fused = (2.0 * bi) @ wo.T + bo       # [5]
    return w_fused, b_fused


def model_forward(x, wi, bi, wo, bo, *, tm_max=4096, use_pallas=None,
                  small_batch_threshold=1024):
    """x: [B, 4]; wi: [4,4]; bi: [4]; wo: [5,4]; bo: [5]  ->  [B, 5]

    Semantics identical to:  h = x @ wi.T + bi ; out = (h + h) @ wo.T + bo
    """
    B, in_f = x.shape
    out_f = wo.shape[0]
    x = x.astype(jnp.float32)
    w_fused, b_fused = _fuse_params(wi, bi, wo, bo)

    if use_pallas is None:
        use_pallas = B >= small_batch_threshold
    if not use_pallas:
        # Tiny batches: a single fused XLA dot beats the fixed pallas_call
        # launch + DMA-prime overhead.
        return x @ w_fused + b_fused

    # Pack fused weight + bias into one tiny (8, 8) tile: one small DMA,
    # resident in VMEM across the whole grid.
    wb = jnp.zeros((PARAM_ROWS, OUT_PAD), jnp.float32)
    wb = wb.at[:in_f, :out_f].set(w_fused)
    wb = wb.at[in_f, :out_f].set(b_fused)

    # Batch tiling: no jnp.pad -- grid = cdiv(B, tm) and Pallas masks the
    # partial last block on both the input read and the output write.
    # Keep the grid length even when >1 so both v7x TensorCores get work.
    n_tiles = pl.cdiv(B, tm_max)
    if n_tiles > 1 and n_tiles % 2 == 1:
        n_tiles += 1
    tm = max(8, _round_up(pl.cdiv(B, n_tiles), 8))
    grid = pl.cdiv(B, tm)

    # Per-step VMEM (lane-padded to 128): 2 buffers x (tm,128) f32 for x and
    # for the output -> ~8 MiB at tm=4096; vmem_limit_bytes=32 MiB gives
    # headroom on v5e (16 MiB default) and matches the v6e/v7x defaults.
    out = pl.pallas_call(
        fused_model_kernel,
        out_shape=jax.ShapeDtypeStruct((B, out_f), jnp.float32),
        grid=(grid,),
        in_specs=[
            pl.BlockSpec((tm, in_f), lambda i: (i, 0)),             # batch tiles
            pl.BlockSpec((PARAM_ROWS, OUT_PAD), lambda i: (0, 0)),  # resident params
        ],
        out_specs=pl.BlockSpec((tm, out_f), lambda i: (i, 0)),
        compiler_params=pltpu.CompilerParams(
            dimension_semantics=("parallel",),
            vmem_limit_bytes=32 * 1024 * 1024,
        ),
    )(x, wb)
    return out


def reference_forward(x, wi, bi, wo, bo):
    h = x @ wi.T + bi
    return (h + h) @ wo.T + bo


if __name__ == "__main__":
    key = jax.random.PRNGKey(0)
    k_x, k_wi, k_bi, k_wo, k_bo, k_x2 = jax.random.split(key, 6)

    in_f, inner_out = INNER_SHAPE          # 4, 4
    outer_in, outer_out = OUTER_SHAPE      # 4, 5

    # Deterministic parameter init (mimics torch.nn.Linear uniform init bounds).
    bound_i = 1.0 / jnp.sqrt(in_f)
    bound_o = 1.0 / jnp.sqrt(outer_in)
    wi = jax.random.uniform(k_wi, (inner_out, in_f), jnp.float32, -bound_i, bound_i)
    bi = jax.random.uniform(k_bi, (inner_out,), jnp.float32, -bound_i, bound_i)
    wo = jax.random.uniform(k_wo, (outer_out, outer_in), jnp.float32, -bound_o, bound_o)
    bo = jax.random.uniform(k_bo, (outer_out,), jnp.float32, -bound_o, bound_o)

    # 1) Tiny batch (the test's typical usage) -> plain-XLA fast path.
    B = 8
    x = jax.random.normal(k_x, (B, in_f), jnp.float32)
    out = jax.block_until_ready(model_forward(x, wi, bi, wo, bo))
    ref = reference_forward(x, wi, bi, wo, bo)
    assert out.shape == (B, outer_out)
    assert jnp.allclose(out, ref, atol=1e-5, rtol=1e-5), "fast path mismatch (B=8)"

    # 1b) Same tiny batch forced through the Pallas kernel (single-block grid).
    out_p = jax.block_until_ready(model_forward(x, wi, bi, wo, bo, use_pallas=True))
    assert out_p.shape == (B, outer_out)
    assert jnp.allclose(out_p, ref, atol=1e-5, rtol=1e-5), "pallas mismatch (B=8)"

    # 2) Larger batch through the Pallas kernel with a small tile, exercising
    #    the multi-step grid and the masked partial last block (1000 % 256 != 0).
    B2 = 1000
    x2 = jax.random.normal(k_x2, (B2, in_f), jnp.float32)
    out2 = jax.block_until_ready(
        model_forward(x2, wi, bi, wo, bo, use_pallas=True, tm_max=256))
    ref2 = reference_forward(x2, wi, bi, wo, bo)
    assert out2.shape == (B2, outer_out)
    assert jnp.allclose(out2, ref2, atol=1e-5, rtol=1e-5), "pallas mismatch (B=1000, tiled)"

    # 3) Default auto-tiled Pallas path (single resident tile at this size).
    out3 = jax.block_until_ready(model_forward(x2, wi, bi, wo, bo, use_pallas=True))
    assert jnp.allclose(out3, ref2, atol=1e-5, rtol=1e-5), "pallas mismatch (B=1000, default)"

    print("KERNEL_OK")
</pallas_src>

<mosaic_0001>
module attributes {stable_mosaic.version = 11 : i64} {
  func.func @fused_model_kernel(%arg0: i32, %arg1: memref<8x4xf32, #tpu.memory_space<vmem>>, %arg2: memref<8x8xf32, #tpu.memory_space<vmem>>, %arg3: memref<8x5xf32, #tpu.memory_space<vmem>>) attributes {dimension_semantics = [#tpu.dimension_semantics<parallel>], iteration_bounds = array<i64: 1>, scalar_prefetch = 0 : i64, scratch_operands = 0 : i64, tpu.core_type = #tpu.core_type<tc>, window_params = [{transform_indices = @transform_0, window_bounds = array<i64: 8, 4>}, {pipeline_mode = #tpu.pipeline_mode<synchronous>, transform_indices = @transform_1, window_bounds = array<i64: 8, 8>}, {transform_indices = @transform_2, window_bounds = array<i64: 8, 5>}]} {
    %c0 = arith.constant 0 : index
    %c0_0 = arith.constant 0 : index
    %0 = vector.load %arg1[%c0, %c0_0] : memref<8x4xf32, #tpu.memory_space<vmem>>, vector<8x4xf32>
    %c4 = arith.constant 4 : index
    %c0_1 = arith.constant 0 : index
    %1 = vector.load %arg2[%c4, %c0_1] : memref<8x8xf32, #tpu.memory_space<vmem>>, vector<1x8xf32>
    %2 = vector.extract_strided_slice %0 {offsets = [0, 0], sizes = [8, 1], strides = [1, 1]} : vector<8x4xf32> to vector<8x1xf32>
    %c0_2 = arith.constant 0 : index
    %c0_3 = arith.constant 0 : index
    %3 = vector.load %arg2[%c0_2, %c0_3] : memref<8x8xf32, #tpu.memory_space<vmem>>, vector<1x8xf32>
    %4 = vector.broadcast %2 : vector<8x1xf32> to vector<8x8xf32>
    %5 = vector.broadcast %3 : vector<1x8xf32> to vector<8x8xf32>
    %6 = arith.mulf %4, %5 : vector<8x8xf32>
    %7 = vector.broadcast %1 : vector<1x8xf32> to vector<8x8xf32>
    %8 = arith.addf %7, %6 : vector<8x8xf32>
    %9 = vector.extract_strided_slice %0 {offsets = [0, 1], sizes = [8, 1], strides = [1, 1]} : vector<8x4xf32> to vector<8x1xf32>
    %c1 = arith.constant 1 : index
    %c0_4 = arith.constant 0 : index
    %10 = vector.load %arg2[%c1, %c0_4] : memref<8x8xf32, #tpu.memory_space<vmem>>, vector<1x8xf32>
    %11 = vector.broadcast %9 : vector<8x1xf32> to vector<8x8xf32>
    %12 = vector.broadcast %10 : vector<1x8xf32> to vector<8x8xf32>
    %13 = arith.mulf %11, %12 : vector<8x8xf32>
    %14 = arith.addf %8, %13 : vector<8x8xf32>
    %15 = vector.extract_strided_slice %0 {offsets = [0, 2], sizes = [8, 1], strides = [1, 1]} : vector<8x4xf32> to vector<8x1xf32>
    %c2 = arith.constant 2 : index
    %c0_5 = arith.constant 0 : index
    %16 = vector.load %arg2[%c2, %c0_5] : memref<8x8xf32, #tpu.memory_space<vmem>>, vector<1x8xf32>
    %17 = vector.broadcast %15 : vector<8x1xf32> to vector<8x8xf32>
    %18 = vector.broadcast %16 : vector<1x8xf32> to vector<8x8xf32>
    %19 = arith.mulf %17, %18 : vector<8x8xf32>
    %20 = arith.addf %14, %19 : vector<8x8xf32>
    %21 = vector.extract_strided_slice %0 {offsets = [0, 3], sizes = [8, 1], strides = [1, 1]} : vector<8x4xf32> to vector<8x1xf32>
    %c3 = arith.constant 3 : index
    %c0_6 = arith.constant 0 : index
    %22 = vector.load %arg2[%c3, %c0_6] : memref<8x8xf32, #tpu.memory_space<vmem>>, vector<1x8xf32>
    %23 = vector.broadcast %21 : vector<8x1xf32> to vector<8x8xf32>
    %24 = vector.broadcast %22 : vector<1x8xf32> to vector<8x8xf32>
    %25 = arith.mulf %23, %24 : vector<8x8xf32>
    %26 = arith.addf %20, %25 : vector<8x8xf32>
    %27 = vector.extract_strided_slice %26 {offsets = [0, 0], sizes = [8, 5], strides = [1, 1]} : vector<8x8xf32> to vector<8x5xf32>
    %c0_7 = arith.constant 0 : index
    %c0_8 = arith.constant 0 : index
    %28 = vector.load %arg3[%c0_7, %c0_8] : memref<8x5xf32, #tpu.memory_space<vmem>>, vector<8x5xf32>
    tpu.vector_store %arg3[%c0_7, %c0_8], %27 {strides = array<i32>} : memref<8x5xf32, #tpu.memory_space<vmem>>, vector<8x5xf32>,
    return
  }
  func.func @transform_0(%arg0: i32) -> (i32, i32) {
    %c0_i32 = arith.constant 0 : i32
    %c0_i32_0 = arith.constant 0 : i32
    return %arg0, %c0_i32 : i32, i32
  }
  func.func @transform_1(%arg0: i32) -> (i32, i32) {
    %c0_i32 = arith.constant 0 : i32
    %c0_i32_0 = arith.constant 0 : i32
    %c0_i32_1 = arith.constant 0 : i32
    return %c0_i32, %c0_i32_0 : i32, i32
  }
  func.func @transform_2(%arg0: i32) -> (i32, i32) {
    %c0_i32 = arith.constant 0 : i32
    %c0_i32_0 = arith.constant 0 : i32
    return %arg0, %c0_i32 : i32, i32
  }
}

</mosaic_0001>

<bundles_post_ra>
// kernel: tpu_custom_call.1
= control target key start
LH: loop header
LB: loop body
LE: loop exit
PB: predicated region body
PF: predicated region fallthrough
CT: control target
= control target key end

     0   :  { %v116_v1 = vmov 0   ;;  %v117_v2 = vmov 2   ;;  %s157_s0 = inlined_call_operand.vmem [shape: f32[8,4], index: 0, kind: input, shape index: {}]   ;;  %s158_s1 = inlined_call_operand.vmem [shape: f32[8,8], index: 1, kind: input, shape index: {}]   ;;  %s159_s2 = inlined_call_operand.hbm [shape: f32[8,5], index: 2, kind: output, shape index: {}]  }
   0x1   :  { %v12_v0 = vld [vmem:[%s157_s0] sm:$0xff]  ;;  %89 = vset.pattern.permute.xlu0 %v116_v1  ;;  %91 = vset.pattern.permute.xlu1 %v117_v2 }
   0x2   :  { %17 = vperm.xlu0 %89, %v12_v0   ;;  %43 = vperm.xlu1 %91, %v12_v0  }
   0x3   :  { %7 = vsyncpa [#allocation3], 0  ;;  %v118_v3 = vmov 1   ;;  %v119_v4 = vmov 3   ;;  %v79_v5 = vld [vmem:[%s158_s1] ss:$0 sm:$0xff] }
   0x4   :  { %v80_v9 = vld [vmem:[%s158_s1 + $0x4] ss:$0 sm:$0xff]  ;;  %v81_v10 = vld [vmem:[%s158_s1 + $0x1] ss:$0 sm:$0xff]  ;;  %v82_v11 = vld [vmem:[%s158_s1 + $0x2] ss:$0 sm:$0xff] }
   0x5   :  { %v83_v13 = vld [vmem:[%s158_s1 + $0x3] ss:$0 sm:$0xff]  ;;  %s120_s20 = smov [#allocation2]   ;;  %vm63_vm0 = vcmask 39936  }
   0x6   :  { %90 = vset.pattern.permute.xlu0 %v118_v3  ;;  %92 = vset.pattern.permute.xlu1 %v119_v4  ;;  %s71_s21 = sshll.u32 %s120_s20, 4  ;;  %s72_s21 = int_to_ptr.vmem [resolvable:$true] %s71_s21 }
   0x7   :  { %32 = vperm.xlu0 %90, %v12_v0   ;;  %54 = vperm.xlu1 %92, %v12_v0   ;;  %s94_s22 = scalar_lea.vmem %s72_s21, 128  ;;  %p99_p1 = scmp.lt.s32.totalorder %s72_s21, %s72_s21 }
   0x8   :  { %p95_p0 = scmp.ne.s32.totalorder %s72_s21, %s94_s22  ;;  %p100_p2 = scmp.lt.s32.totalorder %s94_s22, %s94_s22 }
   0xa   :  { %p101_p3 = por %p100_p2, %p99_p1 }
   0xb   :  { %93 = vset.pattern.permute.xlu0 %v119_v4 }
   0xc   :  { %p102_p4 = pnand %p101_p3, %p95_p0 }
  0x7d   :  { %v18_v6 = vpop.permute.xlu0 %17  ;;  %v44_v7 = vpop.permute.xlu1 %43 }
  0x7e   :  { %v24_v8 = vmul.f32 %v79_v5, %v18_v6  ;;  %v50_v17 = vmul.f32 %v82_v11, %v44_v7 }
  0x80   :  { %v29_v15 = vadd.f32 %v80_v9, %v24_v8 }
  0x82   :  { %v33_v12 = vpop.permute.xlu0 %32  ;;  %v55_v14 = vpop.permute.xlu1 %54 }
  0x83   :  { %v39_v16 = vmul.f32 %v81_v10, %v33_v12  ;;  %v61_v19 = vmul.f32 %v83_v13, %v55_v14 }
  0x85   :  { %v40_v18 = vadd.f32 %v39_v16, %v29_v15 }
  0x87   :  { %v51_v20 = vadd.f32 %v50_v17, %v40_v18 }
  0x89   :  { %v62_v21 = vadd.f32 %v61_v19, %v51_v20 }
  0x8b   :  { %64 = vst.msk [vmem:[#allocation2] sm:$0xff] %vm63_vm0, %v62_v21 }
  0x8c   :  { %105 = shalt.err (!%p102_p4)
}
  0x8d   :  { %74 = dma.vmem_to_hbm [thread:$0]  %s72_s21, 128, %s159_s2, [#allocation3]  }
  0x8e   :  { %114 = dma.done.wait [#allocation3], 128  }
  0x8f   :  { %115 = vsyncadd [#allocation3], 4294967168 }
  0x90   :  { %78 = vsyncpa [#allocation3], 1 }

</bundles_post_ra>
